<compile_context>
chip_gen: v7x
topology: tpu7x:2x2x1
jax: 0.10.0
libtpu: 0.0.40
codegen_flags: <defaults>
</compile_context>

<pallas_src>
import functools

import numpy as np
import jax
import jax.numpy as jnp
from jax.experimental import pallas as pl
from jax.experimental.pallas import tpu as pltpu


def _round_up(x, m):
    return -(-x // m) * m


def _round_down(x, m):
    return (x // m) * m


# --------------------------------------------------------------------------- #
# Kernels
# --------------------------------------------------------------------------- #

def _nz_row_mask(u, v):
    """(TM, 1) f32 mask: 1 where the row of u AND the row of v are not all-zero."""
    nz_u = jnp.max(jnp.abs(u), axis=-1, keepdims=True) > 0.0
    nz_v = jnp.max(jnp.abs(v), axis=-1, keepdims=True) > 0.0
    return (nz_u & nz_v).astype(jnp.float32)


def _normalize(u, v, mean, inv_std):
    """Concat the lane-aligned halves and apply (x - mean) * inv_std (cfg.norm)."""
    x = jnp.concatenate([u, v], axis=-1)          # (TM, Dp); both halves 128-aligned
    return (x - mean) * inv_std


def _lrlinear_id(x, vt, ut, b):
    """LRLinear (init='id'): relu(x @ V^T @ U^T + b) + x; bf16 MXU, f32 accumulate."""
    h = jnp.dot(x.astype(jnp.bfloat16), vt, preferred_element_type=jnp.float32)
    pre = jnp.dot(h.astype(jnp.bfloat16), ut, preferred_element_type=jnp.float32) + b
    return jnp.maximum(pre, 0.0) + x


def _gt_kernel_resident(u_ref, v_ref, mean_ref, inv_std_ref, vt_ref, ut_ref, b_ref,
                        out_ref, *, n_layers):
    """One row tile; all L layers' weights are VMEM-resident (constant block index)."""
    u = u_ref[...]
    v = v_ref[...]
    nz = _nz_row_mask(u, v)
    x = _normalize(u, v, mean_ref[...], inv_std_ref[...])
    for l in range(n_layers):                     # short, statically unrolled IDMLP
        x = _lrlinear_id(x, vt_ref[l], ut_ref[l], b_ref[l])
    out_ref[...] = x * nz                         # row mask applied exactly once


def _gt_kernel_streamed(u_ref, v_ref, mean_ref, inv_std_ref, vt_ref, ut_ref, b_ref,
                        out_ref):
    """Fallback for very large D*mid: layer axis is a grid dim, weights are streamed;
    the output block (same block index for every l) is the layer carry."""
    l = pl.program_id(1)
    last = pl.num_programs(1) - 1

    @pl.when(l == 0)
    def _():
        out_ref[...] = _normalize(u_ref[...], v_ref[...],
                                  mean_ref[...], inv_std_ref[...])

    x = _lrlinear_id(out_ref[...], vt_ref[0], ut_ref[0], b_ref[0])
    out_ref[...] = x

    @pl.when(l == last)
    def _():
        # u/v block indices don't change across l, so this costs no extra DMA.
        out_ref[...] = x * _nz_row_mask(u_ref[...], v_ref[...])


# --------------------------------------------------------------------------- #
# Tiling / VMEM planning
# --------------------------------------------------------------------------- #

def _vmem_limit_bytes():
    """~75% of per-core VMEM (96 MiB on v5e/v6e, 48 MiB on v7x / unknown)."""
    cap = 64 << 20
    try:
        cap = int(getattr(pltpu.get_tpu_info(), "vmem_capacity_bytes", cap))
    except Exception:
        pass
    return max(16 << 20, (cap * 3) // 4)


def _plan_tiles(n_rows, d_pad, mid_pad, n_layers, vmem_limit):
    """Choose (row-tile size, weights-resident?) against the VMEM budget."""
    budget = int(vmem_limit * 0.8)                      # headroom for Mosaic scratch
    # All-layer weights (V^T + U^T bf16, bias f32) + mean/inv_std; x2 pipeline buffers.
    resident_w = 2 * (n_layers * (2 * d_pad * mid_pad * 2 + d_pad * 4) + 2 * d_pad * 4)
    # One layer's weights (double-buffered along the layer grid axis) + mean/inv_std.
    streamed_w = 2 * (2 * d_pad * mid_pad * 2 + d_pad * 4) + 4 * d_pad * 4
    # Per-row bytes: u/v + out tiles (x2 buffers) and f32/bf16 in-kernel temporaries.
    per_row = (4 * d_pad * 4) + (3 * d_pad * 4 + 2 * mid_pad * 4) + (d_pad + mid_pad) * 2

    use_resident = resident_w <= budget // 2
    avail = budget - (resident_w if use_resident else streamed_w)
    if avail < 8 * per_row:
        # Even a single layer's weights nearly fill VMEM: stream them, minimum tile.
        # TODO(synk): sub-tile V^T/U^T along the feature dim for very large D*mid.
        use_resident = False
        avail = max(budget - streamed_w, 8 * per_row)

    tm = min(avail // per_row, 1024, _round_up(n_rows, 8))
    tm = _round_down(tm, 256) if tm >= 256 else _round_down(tm, 8)
    if n_rows > 8:
        # Keep >= 2 row tiles so the "parallel" axis can shard across both v7x TCs.
        tm = min(tm, _round_up(-(-n_rows // 2), 8))
    return max(int(tm), 8), use_resident


# --------------------------------------------------------------------------- #
# Parameter packing (module layout -> kernel layout)
# --------------------------------------------------------------------------- #

def pack_params(params, x_dim, delta_dim):
    """Pad / transpose / cast the module's parameters into the kernel layout.

    Feature layout: [u-half padded to round_up(x_dim,128) | v-half padded to
    round_up(delta_dim,128)] so u and v can be fed to the kernel as separate,
    lane-aligned inputs.  Zero padding is mathematically inert.
    """
    L, mid, D = params["V"].shape
    assert D == x_dim + delta_dim
    dpu = _round_up(x_dim, 128)
    dpv = _round_up(delta_dim, 128)
    midp = _round_up(mid, 128)

    def place(a, fill=0.0):
        """Map the trailing [u|v] feature axis into the [u_pad|v_pad] layout."""
        lead = [(0, 0)] * (a.ndim - 1)
        au = jnp.pad(a[..., :x_dim], lead + [(0, dpu - x_dim)], constant_values=fill)
        av = jnp.pad(a[..., x_dim:], lead + [(0, dpv - delta_dim)], constant_values=fill)
        return jnp.concatenate([au, av], axis=-1)

    mean = place(jnp.concatenate([params["u_mean"], params["v_mean"]]))[None, :]
    std = place(jnp.concatenate([params["u_std"], params["v_std"]]), fill=1.0)
    inv_std = (1.0 / (std + 1e-7))[None, :]

    vt = jnp.transpose(place(params["V"]), (0, 2, 1))                  # (L, Dp, mid)
    vt = jnp.pad(vt, ((0, 0), (0, 0), (0, midp - mid))).astype(jnp.bfloat16)
    ut = place(jnp.transpose(params["U"], (0, 2, 1)))                  # (L, mid, Dp)
    ut = jnp.pad(ut, ((0, 0), (0, midp - mid), (0, 0))).astype(jnp.bfloat16)
    b = place(params["b"])[:, None, :].astype(jnp.float32)             # (L, 1, Dp)

    return {"mean": mean.astype(jnp.float32), "inv_std": inv_std.astype(jnp.float32),
            "vt": vt, "ut": ut, "b": b}


# --------------------------------------------------------------------------- #
# Forward wrapper
# --------------------------------------------------------------------------- #

def _gradient_transform_forward(u, v, kp, *, force_streamed=False):
    """Eval-mode GradientTransform.forward(u, v, param_idx=None) with cfg.norm=True.

    Rows where u or v is entirely zero come out as exact zeros (instead of being
    dropped, which would require a data-dependent output shape)."""
    # TODO(synk): the PyTorch module drops nz-masked rows (data-dependent shape);
    # static-shape Pallas/jit cannot express that, so row compaction is left to
    # the caller (masked rows are returned as exact zeros instead).
    # TODO(synk): training-mode Welford running-stat updates are not implemented;
    # eval-mode normalization buffers are taken as inputs (via pack_params).
    u = u.astype(jnp.float32)
    v = v.astype(jnp.float32)
    x_dim = u.shape[-1]
    delta_dim = v.shape[-1]
    dpu = _round_up(x_dim, 128)
    dpv = _round_up(delta_dim, 128)

    u_ = u.reshape(-1, x_dim)
    v_ = v.reshape(-1, delta_dim)
    N = u_.shape[0]

    Dp = kp["mean"].shape[-1]
    assert Dp == dpu + dpv
    L, _, midp = kp["vt"].shape

    vmem_limit = _vmem_limit_bytes()
    TM, use_resident = _plan_tiles(N, Dp, midp, L, vmem_limit)
    if force_streamed:
        use_resident = False
    Np = _round_up(N, TM)
    row_tiles = Np // TM

    # Row padding + (only when x_dim/delta_dim are not 128 multiples) lane padding.
    # No concatenated x is ever materialized in HBM.
    u_p = jnp.pad(u_, ((0, Np - N), (0, dpu - x_dim)))
    v_p = jnp.pad(v_, ((0, Np - N), (0, dpv - delta_dim)))

    args = (u_p, v_p, kp["mean"], kp["inv_std"], kp["vt"], kp["ut"], kp["b"])
    out_shape = jax.ShapeDtypeStruct((Np, Dp), jnp.float32)

    if use_resident:
        out = pl.pallas_call(
            functools.partial(_gt_kernel_resident, n_layers=L),
            out_shape=out_shape,
            grid=(row_tiles,),
            in_specs=[
                pl.BlockSpec((TM, dpu), lambda i: (i, 0)),           # u rows
                pl.BlockSpec((TM, dpv), lambda i: (i, 0)),           # v rows
                pl.BlockSpec((1, Dp), lambda i: (0, 0)),             # mean
                pl.BlockSpec((1, Dp), lambda i: (0, 0)),             # 1 / (std + eps)
                pl.BlockSpec((L, Dp, midp), lambda i: (0, 0, 0)),    # V^T, all layers resident
                pl.BlockSpec((L, midp, Dp), lambda i: (0, 0, 0)),    # U^T, all layers resident
                pl.BlockSpec((L, 1, Dp), lambda i: (0, 0, 0)),       # bias, all layers resident
            ],
            out_specs=pl.BlockSpec((TM, Dp), lambda i: (i, 0)),
            compiler_params=pltpu.CompilerParams(
                dimension_semantics=("parallel",),
                vmem_limit_bytes=vmem_limit),
        )(*args)
    else:
        out = pl.pallas_call(
            _gt_kernel_streamed,
            out_shape=out_shape,
            grid=(row_tiles, L),
            in_specs=[
                pl.BlockSpec((TM, dpu), lambda i, l: (i, 0)),
                pl.BlockSpec((TM, dpv), lambda i, l: (i, 0)),
                pl.BlockSpec((1, Dp), lambda i, l: (0, 0)),
                pl.BlockSpec((1, Dp), lambda i, l: (0, 0)),
                pl.BlockSpec((1, Dp, midp), lambda i, l: (l, 0, 0)),  # V^T, layer l streamed
                pl.BlockSpec((1, midp, Dp), lambda i, l: (l, 0, 0)),  # U^T, layer l streamed
                pl.BlockSpec((1, 1, Dp), lambda i, l: (l, 0, 0)),     # bias, layer l
            ],
            out_specs=pl.BlockSpec((TM, Dp), lambda i, l: (i, 0)),    # carry across l
            compiler_params=pltpu.CompilerParams(
                dimension_semantics=("parallel", "arbitrary"),
                vmem_limit_bytes=vmem_limit),
        )(*args)

    out1 = out[:N, :x_dim]
    out2 = out[:N, dpu:dpu + delta_dim]
    return out1, out2


gradient_transform_forward = jax.jit(_gradient_transform_forward,
                                     static_argnames=("force_streamed",))


# --------------------------------------------------------------------------- #
# Synthetic parameters + NumPy reference (mirrors the PyTorch eval-mode forward)
# --------------------------------------------------------------------------- #

def make_params(key, x_dim, delta_dim, rank, n_hidden):
    """Synthetic module parameters in the PyTorch layout (eval buffers populated)."""
    D = x_dim + delta_dim
    mid = min(rank, D)
    L = n_hidden + 1
    ks = jax.random.split(key, 6)
    u_mean = 0.1 * jax.random.normal(ks[0], (x_dim,), jnp.float32)
    v_mean = 0.1 * jax.random.normal(ks[1], (delta_dim,), jnp.float32)
    u_std = 1.0 + 0.1 * jnp.abs(jax.random.normal(ks[2], (x_dim,), jnp.float32))
    v_std = 1.0 + 0.1 * jnp.abs(jax.random.normal(ks[3], (delta_dim,), jnp.float32))
    # LRLinear params (module layout): v = (mid, D), u = (D, mid), bias = (D,).
    # V ~ randn as in init='id'; U small-random (instead of zeros) so the matmul
    # path is actually exercised; bias = 0 as in __init__.
    V = jax.random.normal(ks[4], (L, mid, D), jnp.float32)
    U = 0.1 * jax.random.normal(ks[5], (L, D, mid), jnp.float32)
    b = jnp.zeros((L, D), jnp.float32)
    return {"u_mean": u_mean, "v_mean": v_mean, "u_std": u_std, "v_std": v_std,
            "V": V, "U": U, "b": b}


def reference_forward(u, v, params):
    """Pure NumPy mirror of the PyTorch eval-mode forward (cfg.norm=True, param_idx=None)."""
    u = np.asarray(u, np.float32)
    v = np.asarray(v, np.float32)
    x_dim = u.shape[-1]
    u_ = u.reshape(-1, x_dim)
    v_ = v.reshape(-1, v.shape[-1])
    nz = np.any(u_ != 0, -1) & np.any(v_ != 0, -1)
    u_, v_ = u_[nz], v_[nz]
    mean = np.concatenate([np.asarray(params["u_mean"]), np.asarray(params["v_mean"])])
    std = np.concatenate([np.asarray(params["u_std"]), np.asarray(params["v_std"])])
    x = (np.concatenate([u_, v_], -1) - mean) / (std + 1e-7)
    L = params["V"].shape[0]
    for l in range(L):
        V = np.asarray(params["V"][l])   # (mid, D)
        U = np.asarray(params["U"][l])   # (D, mid)
        pre = (U @ (V @ x.T)).T + np.asarray(params["b"][l])
        x = np.maximum(pre, 0.0) + x
    return x[:, :x_dim], x[:, x_dim:], nz


if __name__ == "__main__":
    key = jax.random.PRNGKey(0)
    k_u, k_v, k_p = jax.random.split(key, 3)

    B, S = 2, 4
    x_dim, delta_dim = 16, 16          # module: x_dim / delta_dim
    rank, n_hidden = 8, 1              # cfg.rank / cfg.n_hidden (cfg.init='id', cfg.norm=True)

    u = jax.random.normal(k_u, (B, S, x_dim), jnp.float32)
    v = jax.random.normal(k_v, (B, S, delta_dim), jnp.float32)
    u = u.at[1, 2].set(0.0)            # exercise the nz-mask path

    params = make_params(k_p, x_dim, delta_dim, rank, n_hidden)
    kp = pack_params(params, x_dim, delta_dim)

    r1, r2, nz = reference_forward(u, v, params)

    # Primary (weights-resident) path, then the streamed-per-layer fallback path.
    for force_streamed in (False, True):
        out1, out2 = gradient_transform_forward(u, v, kp, force_streamed=force_streamed)
        jax.block_until_ready((out1, out2))
        o1, o2 = np.asarray(out1), np.asarray(out2)
        # Tolerance accounts for bf16 MXU inputs (f32 accumulation) vs f32 reference.
        np.testing.assert_allclose(o1[nz], r1, rtol=3e-2, atol=3e-2)
        np.testing.assert_allclose(o2[nz], r2, rtol=3e-2, atol=3e-2)
        # Masked (all-zero u/v) rows must come out exactly zero.
        np.testing.assert_allclose(o1[~nz], 0.0, atol=0.0)
        np.testing.assert_allclose(o2[~nz], 0.0, atol=0.0)

    print("KERNEL_OK")
</pallas_src>

<mosaic_0001>
module attributes {stable_mosaic.version = 11 : i64} {
  func.func @_gt_kernel_resident(%arg0: i32, %arg1: memref<8x128xf32, #tpu.memory_space<vmem>>, %arg2: memref<8x128xf32, #tpu.memory_space<vmem>>, %arg3: memref<1x256xf32, #tpu.memory_space<vmem>>, %arg4: memref<1x256xf32, #tpu.memory_space<vmem>>, %arg5: memref<2x256x128xbf16, #tpu.memory_space<vmem>>, %arg6: memref<2x128x256xbf16, #tpu.memory_space<vmem>>, %arg7: memref<2x1x256xf32, #tpu.memory_space<vmem>>, %arg8: memref<8x256xf32, #tpu.memory_space<vmem>>) attributes {dimension_semantics = [#tpu.dimension_semantics<parallel>], iteration_bounds = array<i64: 1>, scalar_prefetch = 0 : i64, scratch_operands = 0 : i64, tpu.core_type = #tpu.core_type<tc>, window_params = [{transform_indices = @transform_0, window_bounds = array<i64: 8, 128>}, {transform_indices = @transform_1, window_bounds = array<i64: 8, 128>}, {pipeline_mode = #tpu.pipeline_mode<synchronous>, transform_indices = @transform_2, window_bounds = array<i64: 1, 256>}, {pipeline_mode = #tpu.pipeline_mode<synchronous>, transform_indices = @transform_3, window_bounds = array<i64: 1, 256>}, {pipeline_mode = #tpu.pipeline_mode<synchronous>, transform_indices = @transform_4, window_bounds = array<i64: 2, 256, 128>}, {pipeline_mode = #tpu.pipeline_mode<synchronous>, transform_indices = @transform_5, window_bounds = array<i64: 2, 128, 256>}, {pipeline_mode = #tpu.pipeline_mode<synchronous>, transform_indices = @transform_6, window_bounds = array<i64: 2, 1, 256>}, {transform_indices = @transform_7, window_bounds = array<i64: 8, 256>}]} {
    %c0 = arith.constant 0 : index
    %c0_0 = arith.constant 0 : index
    %0 = vector.load %arg1[%c0, %c0_0] : memref<8x128xf32, #tpu.memory_space<vmem>>, vector<8x128xf32>
    %c0_1 = arith.constant 0 : index
    %c0_2 = arith.constant 0 : index
    %1 = vector.load %arg2[%c0_1, %c0_2] : memref<8x128xf32, #tpu.memory_space<vmem>>, vector<8x128xf32>
    %2 = math.absf %0 : vector<8x128xf32>
    %cst = arith.constant dense<0xFF800000> : vector<8xf32>
    %3 = vector.multi_reduction <maximumf>, %2, %cst [1] : vector<8x128xf32> to vector<8xf32>
    %4 = vector.shape_cast %3 : vector<8xf32> to vector<8x1xf32>
    %cst_3 = arith.constant 0.000000e+00 : f32
    %5 = vector.broadcast %cst_3 : f32 to vector<8x1xf32>
    %6 = arith.cmpf ogt, %4, %5 : vector<8x1xf32>
    %7 = math.absf %1 : vector<8x128xf32>
    %cst_4 = arith.constant dense<0xFF800000> : vector<8xf32>
    %8 = vector.multi_reduction <maximumf>, %7, %cst_4 [1] : vector<8x128xf32> to vector<8xf32>
    %9 = vector.shape_cast %8 : vector<8xf32> to vector<8x1xf32>
    %cst_5 = arith.constant 0.000000e+00 : f32
    %10 = vector.broadcast %cst_5 : f32 to vector<8x1xf32>
    %11 = arith.cmpf ogt, %9, %10 : vector<8x1xf32>
    %12 = arith.andi %6, %11 : vector<8x1xi1>
    %13 = arith.extui %12 : vector<8x1xi1> to vector<8x1xi32>
    %14 = arith.sitofp %13 : vector<8x1xi32> to vector<8x1xf32>
    %c0_6 = arith.constant 0 : index
    %c0_7 = arith.constant 0 : index
    %15 = vector.load %arg3[%c0_6, %c0_7] : memref<1x256xf32, #tpu.memory_space<vmem>>, vector<1x256xf32>
    %c0_8 = arith.constant 0 : index
    %c0_9 = arith.constant 0 : index
    %16 = vector.load %arg4[%c0_8, %c0_9] : memref<1x256xf32, #tpu.memory_space<vmem>>, vector<1x256xf32>
    %17 = tpu.concatenate %0, %1 in 1 : vector<8x128xf32>, vector<8x128xf32> -> vector<8x256xf32>
    %18 = vector.broadcast %15 : vector<1x256xf32> to vector<8x256xf32>
    %19 = arith.subf %17, %18 : vector<8x256xf32>
    %20 = vector.broadcast %16 : vector<1x256xf32> to vector<8x256xf32>
    %21 = arith.mulf %19, %20 : vector<8x256xf32>
    %c0_10 = arith.constant 0 : index
    %c0_11 = arith.constant 0 : index
    %c0_12 = arith.constant 0 : index
    %22 = vector.load %arg5[%c0_10, %c0_11, %c0_12] : memref<2x256x128xbf16, #tpu.memory_space<vmem>>, vector<1x256x128xbf16>
    %23 = vector.shape_cast %22 : vector<1x256x128xbf16> to vector<256x128xbf16>
    %c0_13 = arith.constant 0 : index
    %c0_14 = arith.constant 0 : index
    %c0_15 = arith.constant 0 : index
    %24 = vector.load %arg6[%c0_13, %c0_14, %c0_15] : memref<2x128x256xbf16, #tpu.memory_space<vmem>>, vector<1x128x256xbf16>
    %25 = vector.shape_cast %24 : vector<1x128x256xbf16> to vector<128x256xbf16>
    %c0_16 = arith.constant 0 : index
    %c0_17 = arith.constant 0 : index
    %c0_18 = arith.constant 0 : index
    %26 = vector.load %arg7[%c0_16, %c0_17, %c0_18] : memref<2x1x256xf32, #tpu.memory_space<vmem>>, vector<1x1x256xf32>
    %27 = vector.shape_cast %26 : vector<1x1x256xf32> to vector<1x256xf32>
    %28 = arith.truncf %21 : vector<8x256xf32> to vector<8x256xbf16>
    %cst_19 = arith.constant dense<0.000000e+00> : vector<8x128xf32>
    %29 = tpu.matmul %28, %23, %cst_19 {dimension_numbers = #tpu.dot_dimension_numbers<[1], [0], [0], [1], [0, 0, 1, 1], [], []>} : vector<8x256xbf16>, vector<256x128xbf16>, vector<8x128xf32> -> vector<8x128xf32>
    %30 = arith.truncf %29 : vector<8x128xf32> to vector<8x128xbf16>
    %cst_20 = arith.constant dense<0.000000e+00> : vector<8x256xf32>
    %31 = tpu.matmul %30, %25, %cst_20 {dimension_numbers = #tpu.dot_dimension_numbers<[1], [0], [0], [1], [0, 0, 1, 1], [], []>} : vector<8x128xbf16>, vector<128x256xbf16>, vector<8x256xf32> -> vector<8x256xf32>
    %32 = vector.broadcast %27 : vector<1x256xf32> to vector<8x256xf32>
    %33 = arith.addf %31, %32 : vector<8x256xf32>
    %cst_21 = arith.constant 0.000000e+00 : f32
    %34 = vector.broadcast %cst_21 : f32 to vector<8x256xf32>
    %35 = arith.maximumf %33, %34 : vector<8x256xf32>
    %36 = arith.addf %35, %21 : vector<8x256xf32>
    %c1 = arith.constant 1 : index
    %c0_22 = arith.constant 0 : index
    %c0_23 = arith.constant 0 : index
    %37 = vector.load %arg5[%c1, %c0_22, %c0_23] : memref<2x256x128xbf16, #tpu.memory_space<vmem>>, vector<1x256x128xbf16>
    %38 = vector.shape_cast %37 : vector<1x256x128xbf16> to vector<256x128xbf16>
    %c1_24 = arith.constant 1 : index
    %c0_25 = arith.constant 0 : index
    %c0_26 = arith.constant 0 : index
    %39 = vector.load %arg6[%c1_24, %c0_25, %c0_26] : memref<2x128x256xbf16, #tpu.memory_space<vmem>>, vector<1x128x256xbf16>
    %40 = vector.shape_cast %39 : vector<1x128x256xbf16> to vector<128x256xbf16>
    %c1_27 = arith.constant 1 : index
    %c0_28 = arith.constant 0 : index
    %c0_29 = arith.constant 0 : index
    %41 = vector.load %arg7[%c1_27, %c0_28, %c0_29] : memref<2x1x256xf32, #tpu.memory_space<vmem>>, vector<1x1x256xf32>
    %42 = vector.shape_cast %41 : vector<1x1x256xf32> to vector<1x256xf32>
    %43 = arith.truncf %36 : vector<8x256xf32> to vector<8x256xbf16>
    %cst_30 = arith.constant dense<0.000000e+00> : vector<8x128xf32>
    %44 = tpu.matmul %43, %38, %cst_30 {dimension_numbers = #tpu.dot_dimension_numbers<[1], [0], [0], [1], [0, 0, 1, 1], [], []>} : vector<8x256xbf16>, vector<256x128xbf16>, vector<8x128xf32> -> vector<8x128xf32>
    %45 = arith.truncf %44 : vector<8x128xf32> to vector<8x128xbf16>
    %cst_31 = arith.constant dense<0.000000e+00> : vector<8x256xf32>
    %46 = tpu.matmul %45, %40, %cst_31 {dimension_numbers = #tpu.dot_dimension_numbers<[1], [0], [0], [1], [0, 0, 1, 1], [], []>} : vector<8x128xbf16>, vector<128x256xbf16>, vector<8x256xf32> -> vector<8x256xf32>
    %47 = vector.broadcast %42 : vector<1x256xf32> to vector<8x256xf32>
    %48 = arith.addf %46, %47 : vector<8x256xf32>
    %cst_32 = arith.constant 0.000000e+00 : f32
    %49 = vector.broadcast %cst_32 : f32 to vector<8x256xf32>
    %50 = arith.maximumf %48, %49 : vector<8x256xf32>
    %51 = arith.addf %50, %36 : vector<8x256xf32>
    %52 = vector.broadcast %14 : vector<8x1xf32> to vector<8x256xf32>
    %53 = arith.mulf %51, %52 : vector<8x256xf32>
    %c0_33 = arith.constant 0 : index
    %c0_34 = arith.constant 0 : index
    %54 = vector.load %arg8[%c0_33, %c0_34] : memref<8x256xf32, #tpu.memory_space<vmem>>, vector<8x256xf32>
    tpu.vector_store %arg8[%c0_33, %c0_34], %53 {strides = array<i32>} : memref<8x256xf32, #tpu.memory_space<vmem>>, vector<8x256xf32>,
    return
  }
  func.func @transform_0(%arg0: i32) -> (i32, i32) {
    %c0_i32 = arith.constant 0 : i32
    %c0_i32_0 = arith.constant 0 : i32
    return %arg0, %c0_i32 : i32, i32
  }
  func.func @transform_1(%arg0: i32) -> (i32, i32) {
    %c0_i32 = arith.constant 0 : i32
    %c0_i32_0 = arith.constant 0 : i32
    return %arg0, %c0_i32 : i32, i32
  }
  func.func @transform_2(%arg0: i32) -> (i32, i32) {
    %c0_i32 = arith.constant 0 : i32
    %c0_i32_0 = arith.constant 0 : i32
    %c0_i32_1 = arith.constant 0 : i32
    return %c0_i32, %c0_i32_0 : i32, i32
  }
  func.func @transform_3(%arg0: i32) -> (i32, i32) {
    %c0_i32 = arith.constant 0 : i32
    %c0_i32_0 = arith.constant 0 : i32
    %c0_i32_1 = arith.constant 0 : i32
    return %c0_i32, %c0_i32_0 : i32, i32
  }
  func.func @transform_4(%arg0: i32) -> (i32, i32, i32) {
    %c0_i32 = arith.constant 0 : i32
    %c0_i32_0 = arith.constant 0 : i32
    %c0_i32_1 = arith.constant 0 : i32
    %c0_i32_2 = arith.constant 0 : i32
    return %c0_i32, %c0_i32_0, %c0_i32_1 : i32, i32, i32
  }
  func.func @transform_5(%arg0: i32) -> (i32, i32, i32) {
    %c0_i32 = arith.constant 0 : i32
    %c0_i32_0 = arith.constant 0 : i32
    %c0_i32_1 = arith.constant 0 : i32
    %c0_i32_2 = arith.constant 0 : i32
    return %c0_i32, %c0_i32_0, %c0_i32_1 : i32, i32, i32
  }
  func.func @transform_6(%arg0: i32) -> (i32, i32, i32) {
    %c0_i32 = arith.constant 0 : i32
    %c0_i32_0 = arith.constant 0 : i32
    %c0_i32_1 = arith.constant 0 : i32
    %c0_i32_2 = arith.constant 0 : i32
    return %c0_i32, %c0_i32_0, %c0_i32_1 : i32, i32, i32
  }
  func.func @transform_7(%arg0: i32) -> (i32, i32) {
    %c0_i32 = arith.constant 0 : i32
    %c0_i32_0 = arith.constant 0 : i32
    return %arg0, %c0_i32 : i32, i32
  }
}

</mosaic_0001>

<bundles_post_ra>
// kernel: _gradient_transform_forward.1
= control target key start
LH: loop header
LB: loop body
LE: loop exit
PB: predicated region body
PF: predicated region fallthrough
CT: control target
= control target key end

     0   :  { %12 = vsyncpa [#allocation3], 0  ;;  %s1129_s0 = inlined_call_operand.vmem [shape: f32[8,128], index: 0, kind: input, shape index: {}]   ;;  %s1130_s1 = inlined_call_operand.vmem [shape: f32[8,128], index: 1, kind: input, shape index: {}]   ;;  %s1131_s2 = inlined_call_operand.vmem [shape: f32[1,256], index: 2, kind: input, shape index: {}]   ;;  %s1132_s3 = inlined_call_operand.vmem [shape: f32[1,256], index: 3, kind: input, shape index: {}]   ;;  %s1133_s4 = inlined_call_operand.hbm [shape: bf16[2,256,128], index: 4, kind: input, shape index: {}]   ;;  %s1134_s5 = inlined_call_operand.hbm [shape: bf16[2,128,256], index: 5, kind: input, shape index: {}]   ;;  %s1135_s6 = inlined_call_operand.vmem [shape: f32[2,1,256], index: 6, kind: input, shape index: {}]   ;;  %s1136_s7 = inlined_call_operand.vmem [shape: f32[8,256], index: 7, kind: output, shape index: {}]  }
   0x1   :  { %13 = vsyncpa [#allocation5], 0  ;;  %s1003_s24 = smov [#allocation2]   ;;  %s955_s28 = scalar_lea.hbm %s1133_s4, 4096 }
   0x2   :  { %s27_s25 = sshll.u32 %s1003_s24, 4  ;;  %p956_p0 = scmp.ne.s32.totalorder %s1133_s4, %s955_s28  ;;  %s28_s25 = int_to_ptr.vmem [resolvable:$true] %s27_s25 }
   0x3   :  { %p959_p1 = scmp.lt.u32.totalorder %s955_s28, %s1133_s4 }
   0x5   :  { %p961_p2 = pnand %p959_p1, %p956_p0 }
   0x7   :  { %964 = shalt.err (!%p961_p2)
}
   0x8   :  { %s965_s10 = scalar_lea.vmem %s28_s25, 4096  ;;  %p970_p4 = scmp.lt.s32.totalorder %s28_s25, %s28_s25 }
   0x9   :  { %p966_p3 = scmp.ne.s32.totalorder %s28_s25, %s965_s10  ;;  %p971_p5 = scmp.lt.s32.totalorder %s965_s10, %s965_s10 }
   0xb   :  { %p972_p6 = por %p971_p5, %p970_p4 }
   0xd   :  { %p973_p7 = pnand %p972_p6, %p966_p3 }
   0xf   :  { %976 = shalt.err (!%p973_p7)
}
  0x10   :  { %s1004_s11 = smov 64   ;;  %s1005_s12 = smov 4  }
  0x11   :  { %33 = dma.hbm_to_vmem [thread:$0]  %s1133_s4, 4096, %s28_s25, [#allocation3], %s1004_s11, %s1004_s11, %s1005_s12  }
  0x12   :  { %s1006_s15 = smov [#allocation4]   ;;  %s977_s19 = scalar_lea.hbm %s1134_s5, 4096 }
  0x13   :  { %s39_s16 = sshll.u32 %s1006_s15, 4  ;;  %p978_p8 = scmp.ne.s32.totalorder %s1134_s5, %s977_s19  ;;  %s40_s16 = int_to_ptr.vmem [resolvable:$true] %s39_s16 }
  0x14   :  { %p981_p9 = scmp.lt.u32.totalorder %s977_s19, %s1134_s5 }
  0x16   :  { %p983_p10 = pnand %p981_p9, %p978_p8 }
  0x18   :  { %986 = shalt.err (!%p983_p10)
}
  0x19   :  { %s987_s24 = scalar_lea.vmem %s40_s16, 4096  ;;  %p992_p12 = scmp.lt.s32.totalorder %s40_s16, %s40_s16 }
  0x1a   :  { %p988_p11 = scmp.ne.s32.totalorder %s40_s16, %s987_s24  ;;  %p993_p13 = scmp.lt.s32.totalorder %s987_s24, %s987_s24 }
  0x1c   :  { %p994_p0 = por %p993_p13, %p992_p12 }
  0x1e   :  { %p995_p1 = pnand %p994_p0, %p988_p11 }
  0x20   :  { %998 = shalt.err (!%p995_p1)
}
  0x21   :  { %s1007_s4 = smov 128   ;;  %s1008_s25 = smov 8  }
  0x22   :  { %45 = dma.hbm_to_vmem [thread:$0]  %s1134_s5, 4096, %s40_s16, [#allocation5], %s1007_s4, %s1007_s4, %s1008_s25  }
  0x23   :  { %999 = dma.done.wait [#allocation3], 4096  }
  0x24   :  { %1000 = vsyncadd [#allocation3], 4294963200 }
  0x25   :  { %1001 = dma.done.wait [#allocation5], 4096  }
  0x26   :  { %1002 = vsyncadd [#allocation5], 4294963200  ;;  %v875_v0 = vld [vmem:[#allocation2 + $0x40] sm:$0xff]   ;;  %v877_v2 = vld [vmem:[#allocation2 + $0x48] sm:$0xff]   ;;  %v71_v5 = vlaneseq  ;;  %v1009_v50 = vmov 0  }
  0x27   :  { %v876_v1 = vld [vmem:[#allocation2] sm:$0xff]   ;;  %823 = vmatprep.subr.bf16.mxu0 %v875_v0  ;;  %v878_v3 = vld [vmem:[#allocation2 + $0x8] sm:$0xff]   ;;  %v879_v4 = vld [vmem:[#allocation2 + $0x50] sm:$0xff]   ;;  %407 = vmatprep.mubr.bf16.mxu1 %v1009_v50 }
  0x28   :  { %824 = vmatpush3.bf16.msra.mxu0 %v876_v1  ;;  %v880_v6 = vld [vmem:[#allocation2 + $0x10] sm:$0xff]   ;;  %v881_v7 = vld [vmem:[#allocation2 + $0x58] sm:$0xff]   ;;  %v72_v8 = vshrl.u32 %v71_v5, 7  ;;  %v883_v10 = vld [vmem:[#allocation2 + $0x60] sm:$0xff]  }
  0x29   :  { %825 = vmatprep.subr.bf16.mxu0 %v877_v2  ;;  %v882_v9 = vld [vmem:[#allocation2 + $0x18] sm:$0xff]   ;;  %v884_v12 = vld [vmem:[#allocation2 + $0x20] sm:$0xff]   ;;  %v885_v14 = vld [vmem:[#allocation2 + $0x68] sm:$0xff]  }
  0x2a   :  { %v1075_v11 = vsub.s32 1, %v72_v8  ;;  %v1077_v13 = vsub.s32 0, %v72_v8  ;;  %v1082_v15 = vld [vmem:[%s1130_s1] sm:$0xff]  ;;  %v886_v18 = vld [vmem:[#allocation2 + $0x28] sm:$0xff]   ;;  %v894_v26 = vld [vmem:[#allocation4 + $0x14] ss:$8 sps:$4 sm:$0xff]  }
  0x2b   :  { %v68_v16 = vld [vmem:[%s1131_s2] sm:$0x3]  ;;  %v891_v22 = vld [vmem:[#allocation4 + $0x4] ss:$8 sps:$4 sm:$0xff]   ;;  %v887_v27 = vld [vmem:[#allocation2 + $0x70] sm:$0xff]  }
  0x2c   :  { %826 = vmatpush3.bf16.msra.mxu0 %v878_v3  ;;  %v69_v17 = vld [vmem:[%s1132_s3] sm:$0x3]  ;;  %v78_v19 = vrot.slane %v68_v16, %v1075_v11  ;;  %v74_v21 = vrot.slane %v68_v16, %v1077_v13  ;;  %375 = vmatprep.subr.bf16.mxu1 %v891_v22  ;;  %v896_v29 = vld [vmem:[#allocation4 + $0x10] ss:$8 sps:$4 sm:$0xff]   ;;  %v897_v32 = vld [vmem:[#allocation4 + $0x24] ss:$8 sps:$4 sm:$0xff]  }
  0x2d   :  { %827 = vmatprep.subr.bf16.mxu0 %v879_v4  ;;  %v91_v20 = vrot.slane %v69_v17, %v1075_v11  ;;  %v893_v23 = vld [vmem:[#allocation4] ss:$8 sps:$4 sm:$0xff]   ;;  %v87_v30 = vrot.slane %v69_v17, %v1077_v13  ;;  %v888_v33 = vld [vmem:[#allocation2 + $0x30] sm:$0xff]   ;;  %v889_v35 = vld [vmem:[#allocation2 + $0x78] sm:$0xff]  }
  0x2e   :  { %v82_v24 = vsub.f32 %v1082_v15, %v78_v19  ;;  %v1097_v25 = vld [vmem:[%s1129_s0] sm:$0xff]  ;;  %376 = vmatpush1.bf16.msra.mxu1 %v893_v23  ;;  %v890_v37 = vld [vmem:[#allocation2 + $0x38] sm:$0xff]   ;;  %v917_v53 = vld [vmem:[#allocation2 + $0xc8] sm:$0xff]  }
  0x2f   :  { %v81_v31 = vsub.f32 %v1097_v25, %v74_v21  ;;  %377 = vmatprep.subr.bf16.mxu1 %v894_v26  ;;  %v899_v36 = vld [vmem:[#allocation4 + $0x20] ss:$8 sps:$4 sm:$0xff]   ;;  %v900_v39 = vld [vmem:[#allocation4 + $0x34] ss:$8 sps:$4 sm:$0xff]   ;;  %v902_v40 = vld [vmem:[#allocation4 + $0x30] ss:$8 sps:$4 sm:$0xff]  }
  0x30   :  { %828 = vmatpush3.bf16.msra.mxu0 %v880_v6  ;;  %v1099_v28 = vmul.f32 %v91_v20, %v82_v24  ;;  %v903_v41 = vld [vmem:[#allocation4 + $0x44] ss:$8 sps:$4 sm:$0xff]   ;;  %v905_v43 = vld [vmem:[#allocation4 + $0x40] ss:$8 sps:$4 sm:$0xff]   ;;  %v906_v44 = vld [vmem:[#allocation4 + $0x54] ss:$8 sps:$4 sm:$0xff]  }
  0x31   :  { %829 = vmatprep.subr.bf16.mxu0 %v881_v7  ;;  %v1105_v38 = vmul.f32 %v87_v30, %v81_v31  ;;  %v908_v45 = vld [vmem:[#allocation4 + $0x50] ss:$8 sps:$4 sm:$0xff]   ;;  %v909_v46 = vld [vmem:[#allocation4 + $0x64] ss:$8 sps:$4 sm:$0xff]   ;;  %v911_v47 = vld [vmem:[#allocation4 + $0x60] ss:$8 sps:$4 sm:$0xff]  }
  0x32   :  { %v146_v34 = vpack.c.bf16 %v1099_v28, %v1099_v28  ;;  %378 = vmatpush1.bf16.msra.mxu1 %v896_v29  ;;  %v912_v48 = vld [vmem:[#allocation4 + $0x74] ss:$8 sps:$4 sm:$0xff]   ;;  %v914_v49 = vld [vmem:[#allocation4 + $0x70] ss:$8 sps:$4 sm:$0xff]   ;;  %v915_v51 = vld [vmem:[#allocation2 + $0xc0] sm:$0xff]  }
  0x33   :  { %379 = vmatprep.subr.bf16.mxu1 %v897_v32  ;;  %v145_v42 = vpack.c.bf16 %v1105_v38, %v1105_v38  ;;  %v916_v52 = vld [vmem:[#allocation2 + $0x80] sm:$0xff]   ;;  %v918_v54 = vld [vmem:[#allocation2 + $0x88] sm:$0xff]   ;;  %v919_v55 = vld [vmem:[#allocation2 + $0xd0] sm:$0xff]  }
  0x34   :  { %830 = vmatpush3.bf16.msra.mxu0 %v882_v9  ;;  %275 = vmatprep.mubr.bf16.mxu0 %v146_v34  ;;  %v920_v56 = vld [vmem:[#allocation2 + $0x90] sm:$0xff]   ;;  %v921_v57 = vld [vmem:[#allocation2 + $0xd8] sm:$0xff]   ;;  %v923_v59 = vld [vmem:[#allocation2 + $0xe0] sm:$0xff]  }
  0x35   :  { %831 = vmatprep.subr.bf16.mxu0 %v883_v10  ;;  %v922_v58 = vld [vmem:[#allocation2 + $0x98] sm:$0xff]   ;;  %v924_v60 = vld [vmem:[#allocation2 + $0xa0] sm:$0xff]   ;;  %v925_v61 = vld [vmem:[#allocation2 + $0xe8] sm:$0xff]  }
  0x36   :  { %380 = vmatpush1.bf16.msra.mxu1 %v899_v36  ;;  %v926_v4 = vld [vmem:[#allocation2 + $0xa8] sm:$0xff]   ;;  %v927_v5 = vld [vmem:[#allocation2 + $0xf0] sm:$0xff]   ;;  %v929_v7 = vld [vmem:[#allocation2 + $0xf8] sm:$0xff]  }
  0x37   :  { %381 = vmatprep.subr.bf16.mxu1 %v900_v39  ;;  %v928_v6 = vld [vmem:[#allocation2 + $0xb0] sm:$0xff]   ;;  %v930_v8 = vld [vmem:[#allocation2 + $0xb8] sm:$0xff]   ;;  %v931_v9 = vld [vmem:[#allocation4 + $0x80] ss:$8 sps:$4 sm:$0xff]  }
  0x38   :  { %832 = vmatpush3.bf16.msra.mxu0 %v884_v12  ;;  %v933_v10 = vld [vmem:[#allocation4 + $0x84] ss:$8 sps:$4 sm:$0xff]   ;;  %v936_v12 = vld [vmem:[#allocation4 + $0x94] ss:$8 sps:$4 sm:$0xff]   ;;  %v937_v17 = vld [vmem:[#allocation4 + $0xa0] ss:$8 sps:$4 sm:$0xff]  }
  0x39   :  { %833 = vmatprep.subr.bf16.mxu0 %v885_v14  ;;  %v934_v14 = vld [vmem:[#allocation4 + $0x90] ss:$8 sps:$4 sm:$0xff]   ;;  %v939_v16 = vld [vmem:[#allocation4 + $0xa4] ss:$8 sps:$4 sm:$0xff]   ;;  %v943_v21 = vld [vmem:[#allocation4 + $0xc0] ss:$8 sps:$4 sm:$0xff]  }
  0x3a   :  { %382 = vmatpush1.bf16.msra.mxu1 %v902_v40  ;;  %v940_v19 = vld [vmem:[#allocation4 + $0xb0] ss:$8 sps:$4 sm:$0xff]   ;;  %v945_v20 = vld [vmem:[#allocation4 + $0xc4] ss:$8 sps:$4 sm:$0xff]   ;;  %v948_v22 = vld [vmem:[#allocation4 + $0xd4] ss:$8 sps:$4 sm:$0xff]  }
  0x3b   :  { %383 = vmatprep.subr.bf16.mxu1 %v903_v41  ;;  %v946_v23 = vld [vmem:[#allocation4 + $0xd0] ss:$8 sps:$4 sm:$0xff]   ;;  %v951_v24 = vld [vmem:[#allocation4 + $0xe4] ss:$8 sps:$4 sm:$0xff]   ;;  %v949_v26 = vld [vmem:[#allocation4 + $0xe0] ss:$8 sps:$4 sm:$0xff]  }
  0x3c   :  { %834 = vmatpush3.bf16.msra.mxu0 %v886_v18  ;;  %v942_v18 = vld [vmem:[#allocation4 + $0xb4] ss:$8 sps:$4 sm:$0xff]  }
  0x3d   :  { %835 = vmatprep.subr.bf16.mxu0 %v887_v27  ;;  %v144_v27 = vld [vmem:[%s1135_s6] sm:$0x3] }
  0x3e   :  { %384 = vmatpush1.bf16.msra.mxu1 %v905_v43  ;;  %v288_v29 = vrot.slane %v144_v27, %v1077_v13  ;;  %v292_v30 = vrot.slane %v144_v27, %v1075_v11 }
  0x3f   :  { %385 = vmatprep.subr.bf16.mxu1 %v906_v44  ;;  %v954_v44 = vld [vmem:[#allocation4 + $0xf4] ss:$8 sps:$4 sm:$0xff]  }
  0x40   :  { %836 = vmatpush3.bf16.msra.mxu0 %v888_v33 }
  0x41   :  { %837 = vmatprep.subr.bf16.mxu0 %v889_v35 }
  0x42   :  { %386 = vmatpush1.bf16.msra.mxu1 %v908_v45  ;;  %v952_v45 = vld [vmem:[#allocation4 + $0xf0] ss:$8 sps:$4 sm:$0xff]  }
  0x43   :  { %387 = vmatprep.subr.bf16.mxu1 %v909_v46  ;;  %v57_v46 = vand.u32 2147483647, %v1097_v25 }
  0x44   :  { %838 = vmatpush3.bf16.msra.mxu0 %v890_v37 }
  0x45   :  { %845 = vmatprep.subr.bf16.mxu0 %v915_v51  ;;  %58 = vmax.xlane.f32.xlu0 %v57_v46 }
  0x46   :  { %388 = vmatpush1.bf16.msra.mxu1 %v911_v47  ;;  %v61_v47 = vand.u32 2147483647, %v1082_v15 }
  0x47   :  { %276 = vmatmul.mubr.bf16.vlgmr.msra.gmra.mrb[0].mxu0 %v145_v42  ;;  %389 = vmatprep.subr.bf16.mxu1 %v912_v48 }
  0x48   :  { %846 = vmatpush3.bf16.msra.mxu0 %v916_v52 }
  0x49   :  { %847 = vmatprep.subr.bf16.mxu0 %v917_v53  ;;  %62 = vmax.xlane.f32.xlu0 %v61_v47  ;;  %v790_v53 = vld [vmem:[%s1135_s6 + $0x2] sm:$0x3] }
  0x4a   :  { %390 = vmatpush1.bf16.msra.mxu1 %v914_v49  ;;  %v619_v25 = vrot.slane %v790_v53, %v1075_v11 }
  0x4b   :  { %702 = vmatprep.subr.bf16.mxu1 %v933_v10 }
  0x4c   :  { %848 = vmatpush3.bf16.msra.mxu0 %v918_v54  ;;  %v615_v54 = vrot.slane %v790_v53, %v1077_v13 }
  0x4d   :  { %849 = vmatprep.subr.bf16.mxu0 %v919_v55 }
  0x50   :  { %850 = vmatpush3.bf16.msra.mxu0 %v920_v56 }
  0x51   :  { %851 = vmatprep.subr.bf16.mxu0 %v921_v57 }
  0x54   :  { %852 = vmatpush3.bf16.msra.mxu0 %v922_v58 }
  0x55   :  { %853 = vmatprep.subr.bf16.mxu0 %v923_v59 }
  0x58   :  { %854 = vmatpush3.bf16.msra.mxu0 %v924_v60 }
  0x59   :  { %855 = vmatprep.subr.bf16.mxu0 %v925_v61 }
  0x5c   :  { %856 = vmatpush3.bf16.msra.mxu0 %v926_v4 }
  0x5d   :  { %857 = vmatprep.subr.bf16.mxu0 %v927_v5 }
  0x60   :  { %858 = vmatpush3.bf16.msra.mxu0 %v928_v6 }
  0x61   :  { %859 = vmatprep.subr.bf16.mxu0 %v929_v7 }
  0x64   :  { %860 = vmatpush3.bf16.msra.mxu0 %v930_v8 }
  0xd2   :  { %v59_v52 = vpop.xlane.xlu0 %58 }
  0xd3   :  { %vm60_vm0 = vcmp.gt.f32.partialorder %v59_v52, 0.0 }
  0xd6   :  { %v63_v55 = vpop.xlane.xlu0 %62 }
  0xd7   :  { %vm64_vm1 = vcmp.gt.f32.partialorder %v63_v55, 0.0 }
  0xd8   :  { %vm65_vm2 = vmand %vm60_vm0, %vm64_vm1 }
 0x11a   :  { %v839_v62 = vpop.f32.mrb[0].mxu0 }
 0x11b   :  { %v840_v63 = vpop.f32.mrb[1].mxu0 }
 0x11c   :  { %v841_v0 = vadd.f32 %v840_v63, %v839_v62  ;;  %v842_v1 = vpop.f32.mrb[2].mxu0 }
 0x11d   :  { %v843_v2 = vpop.f32.mrb[3].mxu0 }
 0x11e   :  { %v283_v3 = vpack.c.bf16 %v841_v0, %v841_v0  ;;  %v1010_v0 = vmov 0.0  }
 0x11f   :  { %v757_v1 = vsel %vm65_vm2, 1.0, %v1010_v0 }
 0x120   :  { %408 = vmatmul.mubr.bf16.vlgmr.msra.gmra.mrb[0].mxu1 %v283_v3 }
 0x121   :  { %734 = vmatprep.mubr.bf16.mxu1 %v1009_v50  ;;  %703 = vmatpush1.bf16.msra.mxu1 %v931_v9 }
 0x122   :  { %704 = vmatprep.subr.bf16.mxu1 %v936_v12 }
 0x125   :  { %705 = vmatpush1.bf16.msra.mxu1 %v934_v14 }
 0x126   :  { %706 = vmatprep.subr.bf16.mxu1 %v939_v16 }
 0x129   :  { %707 = vmatpush1.bf16.msra.mxu1 %v937_v17 }
 0x12a   :  { %708 = vmatprep.subr.bf16.mxu1 %v942_v18 }
 0x12d   :  { %709 = vmatpush1.bf16.msra.mxu1 %v940_v19 }
 0x12e   :  { %710 = vmatprep.subr.bf16.mxu1 %v945_v20 }
 0x131   :  { %711 = vmatpush1.bf16.msra.mxu1 %v943_v21 }
 0x132   :  { %712 = vmatprep.subr.bf16.mxu1 %v948_v22 }
 0x135   :  { %713 = vmatpush1.bf16.msra.mxu1 %v946_v23 }
 0x136   :  { %714 = vmatprep.subr.bf16.mxu1 %v951_v24 }
 0x139   :  { %715 = vmatpush1.bf16.msra.mxu1 %v949_v26 }
 0x13a   :  { %716 = vmatprep.subr.bf16.mxu1 %v954_v44 }
 0x13d   :  { %717 = vmatpush1.bf16.msra.mxu1 %v952_v45 }
 0x1f3   :  { %v409_v31 = vpop.f32.mrb[0].mxu1 }
 0x1f4   :  { %v410_v32 = vadd.f32 %v409_v31, %v288_v29  ;;  %v411_v33 = vpop.f32.mrb[1].mxu1 }
 0x1f5   :  { %v412_v34 = vadd.f32 %v411_v33, %v292_v30  ;;  %v413_v35 = vpop.f32.mrb[2].mxu1 }
 0x1f6   :  { %v416_v36 = vmax.f32 %v410_v32, 0.0  ;;  %v414_v37 = vpop.f32.mrb[3].mxu1 }
 0x1f7   :  { %v417_v39 = vmax.f32 %v412_v34, 0.0 }
 0x1f8   :  { %v418_v40 = vadd.f32 %v416_v36, %v1105_v38 }
 0x1f9   :  { %v419_v41 = vadd.f32 %v417_v39, %v1099_v28 }
 0x1fa   :  { %v472_v43 = vpack.c.bf16 %v418_v40, %v418_v40 }
 0x1fb   :  { %v473_v42 = vpack.c.bf16 %v419_v41, %v419_v41 }
 0x1fd   :  { %602 = vmatprep.mubr.bf16.mxu0 %v473_v42 }
 0x1fe   :  { %603 = vmatmul.mubr.bf16.vlgmr.msra.gmra.mrb[4].mxu0 %v472_v43 }
 0x2d1   :  { %v861_v48 = vpop.f32.mrb[4].mxu0 }
 0x2d2   :  { %v862_v49 = vpop.f32.mrb[5].mxu0 }
 0x2d3   :  { %v863_v50 = vadd.f32 %v862_v49, %v861_v48  ;;  %v864_v38 = vpop.f32.mrb[6].mxu0 }
 0x2d4   :  { %v865_v51 = vpop.f32.mrb[7].mxu0 }
 0x2d5   :  { %v610_v28 = vpack.c.bf16 %v863_v50, %v863_v50 }
 0x2d7   :  { %735 = vmatmul.mubr.bf16.vlgmr.msra.gmra.mrb[4].mxu1 %v610_v28 }
 0x3aa   :  { %v736_v15 = vpop.f32.mrb[4].mxu1 }
 0x3ab   :  { %v737_v56 = vadd.f32 %v736_v15, %v615_v54  ;;  %v738_v57 = vpop.f32.mrb[5].mxu1 }
 0x3ac   :  { %v739_v58 = vadd.f32 %v738_v57, %v619_v25  ;;  %v740_v59 = vpop.f32.mrb[6].mxu1 }
 0x3ad   :  { %v743_v60 = vmax.f32 %v737_v56, 0.0  ;;  %v741_v61 = vpop.f32.mrb[7].mxu1 }
 0x3ae   :  { %v744_v62 = vmax.f32 %v739_v58, 0.0 }
 0x3af   :  { %v745_v63 = vadd.f32 %v743_v60, %v418_v40 }
 0x3b0   :  { %v746_v2 = vadd.f32 %v744_v62, %v419_v41 }
 0x3b1   :  { %v747_v3 = vmul.f32 %v757_v1, %v745_v63 }
 0x3b2   :  { %v748_v13 = vmul.f32 %v757_v1, %v746_v2 }
 0x3b3   :  { %749 = vst [vmem:[%s1136_s7] sm:$0xff] %v747_v3 }
 0x3b4   :  { %750 = vst [vmem:[%s1136_s7 + $0x8] sm:$0xff] %v748_v13 }
 0x3b5   :  { %755 = vsyncpa [#allocation3], 1 }
 0x3b6   :  { %756 = vsyncpa [#allocation5], 1 }

</bundles_post_ra>
